<compile_context>
chip_gen: v6e
topology: v6e:2x2x1
jax: 0.10.0
libtpu: 0.0.40
codegen_flags: <defaults>
</compile_context>

<pallas_src>
import math
import functools

import jax
import jax.numpy as jnp
from jax import lax
from jax.experimental import pallas as pl
from jax.experimental.pallas import tpu as pltpu


def _msa_kernel(q_ref, k_ref, v_ref, w_in_ref, b_in_ref, wo_ref, bo_ref,
                out_ref, attn_ref, k_sc, v_sc, *, h):
    # ---- project K/V for this batch element once (first q-tile only) ------
    @pl.when(pl.program_id(1) == 0)
    def _project_kv():
        k = k_ref[0]                               # (S, E) bf16
        v = v_ref[0]                               # (S, E) bf16
        for i in range(h):                         # static small head loop
            k_sc[i] = (jnp.dot(k, w_in_ref[h + i],
                               preferred_element_type=jnp.float32)
                       + b_in_ref[h + i]).astype(jnp.bfloat16)
            v_sc[i] = (jnp.dot(v, w_in_ref[2 * h + i],
                               preferred_element_type=jnp.float32)
                       + b_in_ref[2 * h + i]).astype(jnp.bfloat16)

    # ---- per q-tile work ---------------------------------------------------
    q = q_ref[0]                                   # (tq, E) bf16
    out_acc = None
    attn_acc = None
    for i in range(h):                             # static small head loop
        # Wq/bq already carry the 1/sqrt(E) softmax scale (folded in wrapper).
        q_i = (jnp.dot(q, w_in_ref[i], preferred_element_type=jnp.float32)
               + b_in_ref[i]).astype(jnp.bfloat16)                    # (tq, E)

        # Q @ K^T without materializing a transpose: contract the last dims.
        s = lax.dot_general(q_i, k_sc[i], (((1,), (1,)), ((), ())),
                            preferred_element_type=jnp.float32)       # (tq, S)

        # Numerically stable softmax in f32; exact reciprocal so returned
        # probabilities sum to 1.
        m = jnp.max(s, axis=-1, keepdims=True)
        e = jnp.exp(s - m)
        p = e * pl.reciprocal(jnp.sum(e, axis=-1, keepdims=True))     # (tq, S)

        attn_acc = p if attn_acc is None else attn_acc + p

        av = jnp.dot(p.astype(jnp.bfloat16), v_sc[i],
                     preferred_element_type=jnp.float32)              # (tq, E)
        o_i = jnp.dot(av.astype(jnp.bfloat16), wo_ref[i],
                      preferred_element_type=jnp.float32)             # (tq, E)
        out_acc = o_i if out_acc is None else out_acc + o_i

    out_ref[0] = (out_acc + bo_ref[...]).astype(out_ref.dtype)
    attn_ref[0] = attn_acc.astype(attn_ref.dtype)


def _vmem_capacity_bytes():
    """Best-effort VMEM capacity query; conservative (v7x-sized) fallback."""
    try:
        info = pltpu.get_tpu_info()
        cap = getattr(info, "vmem_capacity_bytes", None)
        if cap:
            return int(cap)
    except Exception:
        pass
    return 64 * 1024 * 1024


def _vmem_estimate_bytes(q_tile, S, E, h, attn_itemsize):
    bf16, f32 = 2, 4
    est = 0
    est += 2 * q_tile * E * bf16             # q block (double-buffered)
    est += 2 * 2 * S * E * bf16              # k + v blocks (double-buffered)
    est += 2 * 4 * h * E * E * bf16          # packed in/out weights
    est += 2 * 4 * h * E * f32               # biases
    est += 2 * h * S * E * bf16              # K/V projection scratch
    est += 2 * q_tile * E * f32              # out block (double-buffered)
    est += 2 * q_tile * S * attn_itemsize    # attn block (double-buffered)
    est += 4 * q_tile * S * f32              # softmax temporaries headroom
    est += 4 * q_tile * E * f32              # projection temporaries headroom
    return est


def _pick_q_tile(S, E, h, budget, attn_itemsize):
    cands = sorted({c for c in (S, 512, 256, 128, 64, 32, 16, 8)
                    if c <= S and S % c == 0}, reverse=True)
    for c in cands:
        if _vmem_estimate_bytes(c, S, E, h, attn_itemsize) <= budget:
            return c
    return cands[-1]


def multi_self_attention(query, key, value, params, *, q_tile=None,
                         attn_dtype=jnp.float32):
    """query/key/value: [B, S, E] float32. params: dict of stacked head weights."""
    B, S, E = query.shape
    h = params["wq"].shape[0]
    scale = 1.0 / math.sqrt(E)

    # --- one-time weight preprocessing (outside the kernel) ----------------
    # nn.Linear computes x @ W.T + b; pre-transpose each head's W (leading head
    # axis kept so the kernel never slices along the lane dim) and fold the
    # softmax scale into Wq / bq.
    wq_t = jnp.transpose(params["wq"], (0, 2, 1)) * scale        # (h, E, E)
    wk_t = jnp.transpose(params["wk"], (0, 2, 1))
    wv_t = jnp.transpose(params["wv"], (0, 2, 1))
    w_in = jnp.concatenate([wq_t, wk_t, wv_t], axis=0).astype(jnp.bfloat16)  # (3h,E,E)
    b_in = jnp.concatenate([params["bq"] * scale, params["bk"], params["bv"]],
                           axis=0)                               # (3h, 1, E) f32
    wo_t = jnp.transpose(params["wo"], (0, 2, 1)).astype(jnp.bfloat16)  # (h, E, E)
    bo_sum = jnp.sum(params["bo"], axis=0)                       # (1, E) f32

    # bf16 activations: half the HBM->VMEM DMA bytes, no in-kernel casts.
    q_bf = query.astype(jnp.bfloat16)
    k_bf = key.astype(jnp.bfloat16)
    v_bf = value.astype(jnp.bfloat16)

    attn_itemsize = jnp.dtype(attn_dtype).itemsize
    cap = _vmem_capacity_bytes()
    vmem_limit = int(min(cap * 3 // 4, 96 * 1024 * 1024))
    if q_tile is None:
        q_tile = _pick_q_tile(S, E, h, vmem_limit * 3 // 4, attn_itemsize)
    n_qt = S // q_tile

    kernel = functools.partial(_msa_kernel, h=h)

    q_spec = pl.BlockSpec((1, q_tile, E), lambda b, t: (b, t, 0))
    kv_spec = pl.BlockSpec((1, S, E), lambda b, t: (b, 0, 0))
    # Constant index maps -> weights are DMA'd once and stay VMEM-resident.
    w_in_spec = pl.BlockSpec((3 * h, E, E), lambda b, t: (0, 0, 0))
    b_in_spec = pl.BlockSpec((3 * h, 1, E), lambda b, t: (0, 0, 0))
    wo_spec = pl.BlockSpec((h, E, E), lambda b, t: (0, 0, 0))
    bo_spec = pl.BlockSpec((1, E), lambda b, t: (0, 0))

    out_spec = pl.BlockSpec((1, q_tile, E), lambda b, t: (b, t, 0))
    attn_spec = pl.BlockSpec((1, q_tile, S), lambda b, t: (b, t, 0))

    grid_spec = pltpu.PrefetchScalarGridSpec(
        num_scalar_prefetch=0,
        grid=(B, n_qt),
        in_specs=[q_spec, kv_spec, kv_spec,
                  w_in_spec, b_in_spec, wo_spec, bo_spec],
        out_specs=[out_spec, attn_spec],
        scratch_shapes=[pltpu.VMEM((h, S, E), jnp.bfloat16),   # K projections
                        pltpu.VMEM((h, S, E), jnp.bfloat16)],  # V projections
    )

    out, attn = pl.pallas_call(
        kernel,
        out_shape=(jax.ShapeDtypeStruct((B, S, E), jnp.float32),
                   jax.ShapeDtypeStruct((B, S, S), attn_dtype)),
        grid_spec=grid_spec,
        compiler_params=pltpu.CompilerParams(
            # B stays "parallel" (v7x megacore); t is "arbitrary" because the
            # K/V scratch carries state across q-tiles of the same batch.
            dimension_semantics=("parallel", "arbitrary"),
            vmem_limit_bytes=vmem_limit),
    )(q_bf, k_bf, v_bf, w_in, b_in, wo_t, bo_sum)
    return out, attn


def init_params(key, h, E):
    """Deterministic init mimicking nn.Linear default (uniform +/- 1/sqrt(E))."""
    bound = 1.0 / math.sqrt(E)
    names = ["wq", "bq", "wk", "bk", "wv", "bv", "wo", "bo"]
    keys = jax.random.split(key, len(names))
    params = {}
    for name, k in zip(names, keys):
        if name.startswith("w"):
            shape = (h, E, E)
        else:
            shape = (h, 1, E)
        params[name] = jax.random.uniform(
            k, shape, dtype=jnp.float32, minval=-bound, maxval=bound)
    return params


def reference(query, key, value, params):
    """Pure-JAX f32 reference mirroring the PyTorch forward (eval mode)."""
    h = params["wq"].shape[0]
    E = query.shape[-1]
    out_sum = None
    attn_sum = None
    for i in range(h):
        Q = query @ params["wq"][i].T + params["bq"][i]
        K = key @ params["wk"][i].T + params["bk"][i]
        V = value @ params["wv"][i].T + params["bv"][i]
        scores = (Q @ jnp.swapaxes(K, -1, -2)) / math.sqrt(E)
        p = jax.nn.softmax(scores, axis=-1)
        o = (p @ V) @ params["wo"][i].T + params["bo"][i]
        if i == 0:
            out_sum, attn_sum = o, p
        else:
            out_sum = out_sum + o
            attn_sum = attn_sum + p
    return out_sum, attn_sum


if __name__ == "__main__":
    B, S, E, h = 2, 8, 32, 2

    key = jax.random.PRNGKey(0)
    kq, kk, kv, kp = jax.random.split(key, 4)
    query = jax.random.normal(kq, (B, S, E), dtype=jnp.float32)
    key_t = jax.random.normal(kk, (B, S, E), dtype=jnp.float32)
    value = jax.random.normal(kv, (B, S, E), dtype=jnp.float32)
    params = init_params(kp, h, E)

    out, attn = multi_self_attention(query, key_t, value, params)
    jax.block_until_ready((out, attn))

    out_ref, attn_ref = reference(query, key_t, value, params)
    assert out.shape == (B, S, E) and attn.shape == (B, S, S)
    # Tolerances loosened (vs pure-f32) for bf16 activations + bf16 MXU inputs.
    assert jnp.allclose(out, out_ref, atol=3e-2, rtol=3e-2)
    assert jnp.allclose(attn, attn_ref, atol=3e-2, rtol=3e-2)

    print("KERNEL_OK")
</pallas_src>

<mosaic_0001>
module attributes {stable_mosaic.version = 11 : i64} {
  func.func @_msa_kernel(%arg0: i32, %arg1: i32, %arg2: memref<1x8x32xbf16, #tpu.memory_space<vmem>>, %arg3: memref<1x8x32xbf16, #tpu.memory_space<vmem>>, %arg4: memref<1x8x32xbf16, #tpu.memory_space<vmem>>, %arg5: memref<6x32x32xbf16, #tpu.memory_space<vmem>>, %arg6: memref<6x1x32xf32, #tpu.memory_space<vmem>>, %arg7: memref<2x32x32xbf16, #tpu.memory_space<vmem>>, %arg8: memref<1x32xf32, #tpu.memory_space<vmem>>, %arg9: memref<1x8x32xf32, #tpu.memory_space<vmem>>, %arg10: memref<1x8x8xf32, #tpu.memory_space<vmem>>, %arg11: memref<2x8x32xbf16, #tpu.memory_space<vmem>>, %arg12: memref<2x8x32xbf16, #tpu.memory_space<vmem>>) attributes {dimension_semantics = [#tpu.dimension_semantics<parallel>, #tpu.dimension_semantics<arbitrary>], iteration_bounds = array<i64: 2, 1>, scalar_prefetch = 0 : i64, scratch_operands = 2 : i64, tpu.core_type = #tpu.core_type<tc>, window_params = [{transform_indices = @transform_0, window_bounds = array<i64: 1, 8, 32>}, {transform_indices = @transform_1, window_bounds = array<i64: 1, 8, 32>}, {transform_indices = @transform_2, window_bounds = array<i64: 1, 8, 32>}, {pipeline_mode = #tpu.pipeline_mode<synchronous>, transform_indices = @transform_3, window_bounds = array<i64: 6, 32, 32>}, {pipeline_mode = #tpu.pipeline_mode<synchronous>, transform_indices = @transform_4, window_bounds = array<i64: 6, 1, 32>}, {pipeline_mode = #tpu.pipeline_mode<synchronous>, transform_indices = @transform_5, window_bounds = array<i64: 2, 32, 32>}, {pipeline_mode = #tpu.pipeline_mode<synchronous>, transform_indices = @transform_6, window_bounds = array<i64: 1, 32>}, {transform_indices = @transform_7, window_bounds = array<i64: 1, 8, 32>}, {transform_indices = @transform_8, window_bounds = array<i64: 1, 8, 8>}]} {
    %c0_i32 = arith.constant 0 : i32
    %0 = arith.cmpi eq, %arg1, %c0_i32 : i32
    %1 = arith.extui %0 : i1 to i32
    %c0_i32_0 = arith.constant 0 : i32
    %2 = arith.cmpi ne, %1, %c0_i32_0 : i32
    scf.if %2 {
      %c0_51 = arith.constant 0 : index
      %c0_52 = arith.constant 0 : index
      %c0_53 = arith.constant 0 : index
      %74 = vector.load %arg3[%c0_51, %c0_52, %c0_53] : memref<1x8x32xbf16, #tpu.memory_space<vmem>>, vector<1x8x32xbf16>
      %75 = vector.shape_cast %74 : vector<1x8x32xbf16> to vector<8x32xbf16>
      %c0_54 = arith.constant 0 : index
      %c0_55 = arith.constant 0 : index
      %c0_56 = arith.constant 0 : index
      %76 = vector.load %arg4[%c0_54, %c0_55, %c0_56] : memref<1x8x32xbf16, #tpu.memory_space<vmem>>, vector<1x8x32xbf16>
      %77 = vector.shape_cast %76 : vector<1x8x32xbf16> to vector<8x32xbf16>
      %c2 = arith.constant 2 : index
      %c0_57 = arith.constant 0 : index
      %c0_58 = arith.constant 0 : index
      %78 = vector.load %arg5[%c2, %c0_57, %c0_58] : memref<6x32x32xbf16, #tpu.memory_space<vmem>>, vector<1x32x32xbf16>
      %79 = vector.shape_cast %78 : vector<1x32x32xbf16> to vector<32x32xbf16>
      %cst_59 = arith.constant dense<0.000000e+00> : vector<8x32xf32>
      %80 = tpu.matmul %75, %79, %cst_59 {dimension_numbers = #tpu.dot_dimension_numbers<[1], [0], [0], [1], [0, 0, 1, 1], [], []>} : vector<8x32xbf16>, vector<32x32xbf16>, vector<8x32xf32> -> vector<8x32xf32>
      %c2_60 = arith.constant 2 : index
      %c0_61 = arith.constant 0 : index
      %c0_62 = arith.constant 0 : index
      %81 = vector.load %arg6[%c2_60, %c0_61, %c0_62] : memref<6x1x32xf32, #tpu.memory_space<vmem>>, vector<1x1x32xf32>
      %82 = vector.shape_cast %81 : vector<1x1x32xf32> to vector<1x32xf32>
      %83 = vector.broadcast %82 : vector<1x32xf32> to vector<8x32xf32>
      %84 = arith.addf %80, %83 : vector<8x32xf32>
      %85 = arith.truncf %84 : vector<8x32xf32> to vector<8x32xbf16>
      %c0_63 = arith.constant 0 : index
      %c0_64 = arith.constant 0 : index
      %c0_65 = arith.constant 0 : index
      %86 = vector.load %arg11[%c0_63, %c0_64, %c0_65] : memref<2x8x32xbf16, #tpu.memory_space<vmem>>, vector<1x8x32xbf16>
      %87 = vector.shape_cast %86 : vector<1x8x32xbf16> to vector<8x32xbf16>
      %88 = vector.shape_cast %85 : vector<8x32xbf16> to vector<1x8x32xbf16>
      tpu.vector_store %arg11[%c0_63, %c0_64, %c0_65], %88 {strides = array<i32>} : memref<2x8x32xbf16, #tpu.memory_space<vmem>>, vector<1x8x32xbf16>,
      %c4 = arith.constant 4 : index
      %c0_66 = arith.constant 0 : index
      %c0_67 = arith.constant 0 : index
      %89 = vector.load %arg5[%c4, %c0_66, %c0_67] : memref<6x32x32xbf16, #tpu.memory_space<vmem>>, vector<1x32x32xbf16>
      %90 = vector.shape_cast %89 : vector<1x32x32xbf16> to vector<32x32xbf16>
      %cst_68 = arith.constant dense<0.000000e+00> : vector<8x32xf32>
      %91 = tpu.matmul %77, %90, %cst_68 {dimension_numbers = #tpu.dot_dimension_numbers<[1], [0], [0], [1], [0, 0, 1, 1], [], []>} : vector<8x32xbf16>, vector<32x32xbf16>, vector<8x32xf32> -> vector<8x32xf32>
      %c4_69 = arith.constant 4 : index
      %c0_70 = arith.constant 0 : index
      %c0_71 = arith.constant 0 : index
      %92 = vector.load %arg6[%c4_69, %c0_70, %c0_71] : memref<6x1x32xf32, #tpu.memory_space<vmem>>, vector<1x1x32xf32>
      %93 = vector.shape_cast %92 : vector<1x1x32xf32> to vector<1x32xf32>
      %94 = vector.broadcast %93 : vector<1x32xf32> to vector<8x32xf32>
      %95 = arith.addf %91, %94 : vector<8x32xf32>
      %96 = arith.truncf %95 : vector<8x32xf32> to vector<8x32xbf16>
      %c0_72 = arith.constant 0 : index
      %c0_73 = arith.constant 0 : index
      %c0_74 = arith.constant 0 : index
      %97 = vector.load %arg12[%c0_72, %c0_73, %c0_74] : memref<2x8x32xbf16, #tpu.memory_space<vmem>>, vector<1x8x32xbf16>
      %98 = vector.shape_cast %97 : vector<1x8x32xbf16> to vector<8x32xbf16>
      %99 = vector.shape_cast %96 : vector<8x32xbf16> to vector<1x8x32xbf16>
      tpu.vector_store %arg12[%c0_72, %c0_73, %c0_74], %99 {strides = array<i32>} : memref<2x8x32xbf16, #tpu.memory_space<vmem>>, vector<1x8x32xbf16>,
      %c3 = arith.constant 3 : index
      %c0_75 = arith.constant 0 : index
      %c0_76 = arith.constant 0 : index
      %100 = vector.load %arg5[%c3, %c0_75, %c0_76] : memref<6x32x32xbf16, #tpu.memory_space<vmem>>, vector<1x32x32xbf16>
      %101 = vector.shape_cast %100 : vector<1x32x32xbf16> to vector<32x32xbf16>
      %cst_77 = arith.constant dense<0.000000e+00> : vector<8x32xf32>
      %102 = tpu.matmul %75, %101, %cst_77 {dimension_numbers = #tpu.dot_dimension_numbers<[1], [0], [0], [1], [0, 0, 1, 1], [], []>} : vector<8x32xbf16>, vector<32x32xbf16>, vector<8x32xf32> -> vector<8x32xf32>
      %c3_78 = arith.constant 3 : index
      %c0_79 = arith.constant 0 : index
      %c0_80 = arith.constant 0 : index
      %103 = vector.load %arg6[%c3_78, %c0_79, %c0_80] : memref<6x1x32xf32, #tpu.memory_space<vmem>>, vector<1x1x32xf32>
      %104 = vector.shape_cast %103 : vector<1x1x32xf32> to vector<1x32xf32>
      %105 = vector.broadcast %104 : vector<1x32xf32> to vector<8x32xf32>
      %106 = arith.addf %102, %105 : vector<8x32xf32>
      %107 = arith.truncf %106 : vector<8x32xf32> to vector<8x32xbf16>
      %c1_81 = arith.constant 1 : index
      %c0_82 = arith.constant 0 : index
      %c0_83 = arith.constant 0 : index
      %108 = vector.load %arg11[%c1_81, %c0_82, %c0_83] : memref<2x8x32xbf16, #tpu.memory_space<vmem>>, vector<1x8x32xbf16>
      %109 = vector.shape_cast %108 : vector<1x8x32xbf16> to vector<8x32xbf16>
      %110 = vector.shape_cast %107 : vector<8x32xbf16> to vector<1x8x32xbf16>
      tpu.vector_store %arg11[%c1_81, %c0_82, %c0_83], %110 {strides = array<i32>} : memref<2x8x32xbf16, #tpu.memory_space<vmem>>, vector<1x8x32xbf16>,
      %c5 = arith.constant 5 : index
      %c0_84 = arith.constant 0 : index
      %c0_85 = arith.constant 0 : index
      %111 = vector.load %arg5[%c5, %c0_84, %c0_85] : memref<6x32x32xbf16, #tpu.memory_space<vmem>>, vector<1x32x32xbf16>
      %112 = vector.shape_cast %111 : vector<1x32x32xbf16> to vector<32x32xbf16>
      %cst_86 = arith.constant dense<0.000000e+00> : vector<8x32xf32>
      %113 = tpu.matmul %77, %112, %cst_86 {dimension_numbers = #tpu.dot_dimension_numbers<[1], [0], [0], [1], [0, 0, 1, 1], [], []>} : vector<8x32xbf16>, vector<32x32xbf16>, vector<8x32xf32> -> vector<8x32xf32>
      %c5_87 = arith.constant 5 : index
      %c0_88 = arith.constant 0 : index
      %c0_89 = arith.constant 0 : index
      %114 = vector.load %arg6[%c5_87, %c0_88, %c0_89] : memref<6x1x32xf32, #tpu.memory_space<vmem>>, vector<1x1x32xf32>
      %115 = vector.shape_cast %114 : vector<1x1x32xf32> to vector<1x32xf32>
      %116 = vector.broadcast %115 : vector<1x32xf32> to vector<8x32xf32>
      %117 = arith.addf %113, %116 : vector<8x32xf32>
      %118 = arith.truncf %117 : vector<8x32xf32> to vector<8x32xbf16>
      %c1_90 = arith.constant 1 : index
      %c0_91 = arith.constant 0 : index
      %c0_92 = arith.constant 0 : index
      %119 = vector.load %arg12[%c1_90, %c0_91, %c0_92] : memref<2x8x32xbf16, #tpu.memory_space<vmem>>, vector<1x8x32xbf16>
      %120 = vector.shape_cast %119 : vector<1x8x32xbf16> to vector<8x32xbf16>
      %121 = vector.shape_cast %118 : vector<8x32xbf16> to vector<1x8x32xbf16>
      tpu.vector_store %arg12[%c1_90, %c0_91, %c0_92], %121 {strides = array<i32>} : memref<2x8x32xbf16, #tpu.memory_space<vmem>>, vector<1x8x32xbf16>,
    } else {
    }
    %c0 = arith.constant 0 : index
    %c0_1 = arith.constant 0 : index
    %c0_2 = arith.constant 0 : index
    %3 = vector.load %arg2[%c0, %c0_1, %c0_2] : memref<1x8x32xbf16, #tpu.memory_space<vmem>>, vector<1x8x32xbf16>
    %4 = vector.shape_cast %3 : vector<1x8x32xbf16> to vector<8x32xbf16>
    %c0_3 = arith.constant 0 : index
    %c0_4 = arith.constant 0 : index
    %c0_5 = arith.constant 0 : index
    %5 = vector.load %arg5[%c0_3, %c0_4, %c0_5] : memref<6x32x32xbf16, #tpu.memory_space<vmem>>, vector<1x32x32xbf16>
    %6 = vector.shape_cast %5 : vector<1x32x32xbf16> to vector<32x32xbf16>
    %cst = arith.constant dense<0.000000e+00> : vector<8x32xf32>
    %7 = tpu.matmul %4, %6, %cst {dimension_numbers = #tpu.dot_dimension_numbers<[1], [0], [0], [1], [0, 0, 1, 1], [], []>} : vector<8x32xbf16>, vector<32x32xbf16>, vector<8x32xf32> -> vector<8x32xf32>
    %c0_6 = arith.constant 0 : index
    %c0_7 = arith.constant 0 : index
    %c0_8 = arith.constant 0 : index
    %8 = vector.load %arg6[%c0_6, %c0_7, %c0_8] : memref<6x1x32xf32, #tpu.memory_space<vmem>>, vector<1x1x32xf32>
    %9 = vector.shape_cast %8 : vector<1x1x32xf32> to vector<1x32xf32>
    %10 = vector.broadcast %9 : vector<1x32xf32> to vector<8x32xf32>
    %11 = arith.addf %7, %10 : vector<8x32xf32>
    %12 = arith.truncf %11 : vector<8x32xf32> to vector<8x32xbf16>
    %c0_9 = arith.constant 0 : index
    %c0_10 = arith.constant 0 : index
    %c0_11 = arith.constant 0 : index
    %13 = vector.load %arg11[%c0_9, %c0_10, %c0_11] : memref<2x8x32xbf16, #tpu.memory_space<vmem>>, vector<1x8x32xbf16>
    %14 = vector.shape_cast %13 : vector<1x8x32xbf16> to vector<8x32xbf16>
    %cst_12 = arith.constant dense<0.000000e+00> : vector<8x8xf32>
    %15 = tpu.matmul %12, %14, %cst_12 {dimension_numbers = #tpu.dot_dimension_numbers<[1], [1], [0], [0], [0, 0, 1, 0], [], []>} : vector<8x32xbf16>, vector<8x32xbf16>, vector<8x8xf32> -> vector<8x8xf32>
    %cst_13 = arith.constant dense<0xFF800000> : vector<8xf32>
    %16 = vector.multi_reduction <maximumf>, %15, %cst_13 [1] : vector<8x8xf32> to vector<8xf32>
    %17 = vector.shape_cast %16 : vector<8xf32> to vector<8x1xf32>
    %18 = vector.broadcast %17 : vector<8x1xf32> to vector<8x8xf32>
    %19 = arith.subf %15, %18 : vector<8x8xf32>
    %20 = math.exp %19 : vector<8x8xf32>
    %cst_14 = arith.constant dense<0.000000e+00> : vector<8xf32>
    %21 = vector.multi_reduction <add>, %20, %cst_14 [1] : vector<8x8xf32> to vector<8xf32>
    %22 = vector.shape_cast %21 : vector<8xf32> to vector<8x1xf32>
    %23 = tpu.reciprocal %22 : vector<8x1xf32> -> vector<8x1xf32>
    %24 = vector.broadcast %23 : vector<8x1xf32> to vector<8x8xf32>
    %25 = arith.mulf %20, %24 : vector<8x8xf32>
    %26 = arith.truncf %25 : vector<8x8xf32> to vector<8x8xbf16>
    %c0_15 = arith.constant 0 : index
    %c0_16 = arith.constant 0 : index
    %c0_17 = arith.constant 0 : index
    %27 = vector.load %arg12[%c0_15, %c0_16, %c0_17] : memref<2x8x32xbf16, #tpu.memory_space<vmem>>, vector<1x8x32xbf16>
    %28 = vector.shape_cast %27 : vector<1x8x32xbf16> to vector<8x32xbf16>
    %cst_18 = arith.constant dense<0.000000e+00> : vector<8x32xf32>
    %29 = tpu.matmul %26, %28, %cst_18 {dimension_numbers = #tpu.dot_dimension_numbers<[1], [0], [0], [1], [0, 0, 1, 1], [], []>} : vector<8x8xbf16>, vector<8x32xbf16>, vector<8x32xf32> -> vector<8x32xf32>
    %30 = arith.truncf %29 : vector<8x32xf32> to vector<8x32xbf16>
    %c0_19 = arith.constant 0 : index
    %c0_20 = arith.constant 0 : index
    %c0_21 = arith.constant 0 : index
    %31 = vector.load %arg7[%c0_19, %c0_20, %c0_21] : memref<2x32x32xbf16, #tpu.memory_space<vmem>>, vector<1x32x32xbf16>
    %32 = vector.shape_cast %31 : vector<1x32x32xbf16> to vector<32x32xbf16>
    %cst_22 = arith.constant dense<0.000000e+00> : vector<8x32xf32>
    %33 = tpu.matmul %30, %32, %cst_22 {dimension_numbers = #tpu.dot_dimension_numbers<[1], [0], [0], [1], [0, 0, 1, 1], [], []>} : vector<8x32xbf16>, vector<32x32xbf16>, vector<8x32xf32> -> vector<8x32xf32>
    %c1 = arith.constant 1 : index
    %c0_23 = arith.constant 0 : index
    %c0_24 = arith.constant 0 : index
    %34 = vector.load %arg5[%c1, %c0_23, %c0_24] : memref<6x32x32xbf16, #tpu.memory_space<vmem>>, vector<1x32x32xbf16>
    %35 = vector.shape_cast %34 : vector<1x32x32xbf16> to vector<32x32xbf16>
    %cst_25 = arith.constant dense<0.000000e+00> : vector<8x32xf32>
    %36 = tpu.matmul %4, %35, %cst_25 {dimension_numbers = #tpu.dot_dimension_numbers<[1], [0], [0], [1], [0, 0, 1, 1], [], []>} : vector<8x32xbf16>, vector<32x32xbf16>, vector<8x32xf32> -> vector<8x32xf32>
    %c1_26 = arith.constant 1 : index
    %c0_27 = arith.constant 0 : index
    %c0_28 = arith.constant 0 : index
    %37 = vector.load %arg6[%c1_26, %c0_27, %c0_28] : memref<6x1x32xf32, #tpu.memory_space<vmem>>, vector<1x1x32xf32>
    %38 = vector.shape_cast %37 : vector<1x1x32xf32> to vector<1x32xf32>
    %39 = vector.broadcast %38 : vector<1x32xf32> to vector<8x32xf32>
    %40 = arith.addf %36, %39 : vector<8x32xf32>
    %41 = arith.truncf %40 : vector<8x32xf32> to vector<8x32xbf16>
    %c1_29 = arith.constant 1 : index
    %c0_30 = arith.constant 0 : index
    %c0_31 = arith.constant 0 : index
    %42 = vector.load %arg11[%c1_29, %c0_30, %c0_31] : memref<2x8x32xbf16, #tpu.memory_space<vmem>>, vector<1x8x32xbf16>
    %43 = vector.shape_cast %42 : vector<1x8x32xbf16> to vector<8x32xbf16>
    %cst_32 = arith.constant dense<0.000000e+00> : vector<8x8xf32>
    %44 = tpu.matmul %41, %43, %cst_32 {dimension_numbers = #tpu.dot_dimension_numbers<[1], [1], [0], [0], [0, 0, 1, 0], [], []>} : vector<8x32xbf16>, vector<8x32xbf16>, vector<8x8xf32> -> vector<8x8xf32>
    %cst_33 = arith.constant dense<0xFF800000> : vector<8xf32>
    %45 = vector.multi_reduction <maximumf>, %44, %cst_33 [1] : vector<8x8xf32> to vector<8xf32>
    %46 = vector.shape_cast %45 : vector<8xf32> to vector<8x1xf32>
    %47 = vector.broadcast %46 : vector<8x1xf32> to vector<8x8xf32>
    %48 = arith.subf %44, %47 : vector<8x8xf32>
    %49 = math.exp %48 : vector<8x8xf32>
    %cst_34 = arith.constant dense<0.000000e+00> : vector<8xf32>
    %50 = vector.multi_reduction <add>, %49, %cst_34 [1] : vector<8x8xf32> to vector<8xf32>
    %51 = vector.shape_cast %50 : vector<8xf32> to vector<8x1xf32>
    %52 = tpu.reciprocal %51 : vector<8x1xf32> -> vector<8x1xf32>
    %53 = vector.broadcast %52 : vector<8x1xf32> to vector<8x8xf32>
    %54 = arith.mulf %49, %53 : vector<8x8xf32>
    %55 = arith.addf %25, %54 : vector<8x8xf32>
    %56 = arith.truncf %54 : vector<8x8xf32> to vector<8x8xbf16>
    %c1_35 = arith.constant 1 : index
    %c0_36 = arith.constant 0 : index
    %c0_37 = arith.constant 0 : index
    %57 = vector.load %arg12[%c1_35, %c0_36, %c0_37] : memref<2x8x32xbf16, #tpu.memory_space<vmem>>, vector<1x8x32xbf16>
    %58 = vector.shape_cast %57 : vector<1x8x32xbf16> to vector<8x32xbf16>
    %cst_38 = arith.constant dense<0.000000e+00> : vector<8x32xf32>
    %59 = tpu.matmul %56, %58, %cst_38 {dimension_numbers = #tpu.dot_dimension_numbers<[1], [0], [0], [1], [0, 0, 1, 1], [], []>} : vector<8x8xbf16>, vector<8x32xbf16>, vector<8x32xf32> -> vector<8x32xf32>
    %60 = arith.truncf %59 : vector<8x32xf32> to vector<8x32xbf16>
    %c1_39 = arith.constant 1 : index
    %c0_40 = arith.constant 0 : index
    %c0_41 = arith.constant 0 : index
    %61 = vector.load %arg7[%c1_39, %c0_40, %c0_41] : memref<2x32x32xbf16, #tpu.memory_space<vmem>>, vector<1x32x32xbf16>
    %62 = vector.shape_cast %61 : vector<1x32x32xbf16> to vector<32x32xbf16>
    %cst_42 = arith.constant dense<0.000000e+00> : vector<8x32xf32>
    %63 = tpu.matmul %60, %62, %cst_42 {dimension_numbers = #tpu.dot_dimension_numbers<[1], [0], [0], [1], [0, 0, 1, 1], [], []>} : vector<8x32xbf16>, vector<32x32xbf16>, vector<8x32xf32> -> vector<8x32xf32>
    %64 = arith.addf %33, %63 : vector<8x32xf32>
    %c0_43 = arith.constant 0 : index
    %c0_44 = arith.constant 0 : index
    %65 = vector.load %arg8[%c0_43, %c0_44] : memref<1x32xf32, #tpu.memory_space<vmem>>, vector<1x32xf32>
    %66 = vector.broadcast %65 : vector<1x32xf32> to vector<8x32xf32>
    %67 = arith.addf %64, %66 : vector<8x32xf32>
    %c0_45 = arith.constant 0 : index
    %c0_46 = arith.constant 0 : index
    %c0_47 = arith.constant 0 : index
    %68 = vector.load %arg9[%c0_45, %c0_46, %c0_47] : memref<1x8x32xf32, #tpu.memory_space<vmem>>, vector<1x8x32xf32>
    %69 = vector.shape_cast %68 : vector<1x8x32xf32> to vector<8x32xf32>
    %70 = vector.shape_cast %67 : vector<8x32xf32> to vector<1x8x32xf32>
    tpu.vector_store %arg9[%c0_45, %c0_46, %c0_47], %70 {strides = array<i32>} : memref<1x8x32xf32, #tpu.memory_space<vmem>>, vector<1x8x32xf32>,
    %c0_48 = arith.constant 0 : index
    %c0_49 = arith.constant 0 : index
    %c0_50 = arith.constant 0 : index
    %71 = vector.load %arg10[%c0_48, %c0_49, %c0_50] : memref<1x8x8xf32, #tpu.memory_space<vmem>>, vector<1x8x8xf32>
    %72 = vector.shape_cast %71 : vector<1x8x8xf32> to vector<8x8xf32>
    %73 = vector.shape_cast %55 : vector<8x8xf32> to vector<1x8x8xf32>
    tpu.vector_store %arg10[%c0_48, %c0_49, %c0_50], %73 {strides = array<i32>} : memref<1x8x8xf32, #tpu.memory_space<vmem>>, vector<1x8x8xf32>,
    return
  }
  func.func @transform_0(%arg0: i32, %arg1: i32) -> (i32, i32, i32) {
    %c0_i32 = arith.constant 0 : i32
    %c0_i32_0 = arith.constant 0 : i32
    return %arg0, %arg1, %c0_i32 : i32, i32, i32
  }
  func.func @transform_1(%arg0: i32, %arg1: i32) -> (i32, i32, i32) {
    %c0_i32 = arith.constant 0 : i32
    %c0_i32_0 = arith.constant 0 : i32
    %c0_i32_1 = arith.constant 0 : i32
    return %arg0, %c0_i32, %c0_i32_0 : i32, i32, i32
  }
  func.func @transform_2(%arg0: i32, %arg1: i32) -> (i32, i32, i32) {
    %c0_i32 = arith.constant 0 : i32
    %c0_i32_0 = arith.constant 0 : i32
    %c0_i32_1 = arith.constant 0 : i32
    return %arg0, %c0_i32, %c0_i32_0 : i32, i32, i32
  }
  func.func @transform_3(%arg0: i32, %arg1: i32) -> (i32, i32, i32) {
    %c0_i32 = arith.constant 0 : i32
    %c0_i32_0 = arith.constant 0 : i32
    %c0_i32_1 = arith.constant 0 : i32
    %c0_i32_2 = arith.constant 0 : i32
    return %c0_i32, %c0_i32_0, %c0_i32_1 : i32, i32, i32
  }
  func.func @transform_4(%arg0: i32, %arg1: i32) -> (i32, i32, i32) {
    %c0_i32 = arith.constant 0 : i32
    %c0_i32_0 = arith.constant 0 : i32
    %c0_i32_1 = arith.constant 0 : i32
    %c0_i32_2 = arith.constant 0 : i32
    return %c0_i32, %c0_i32_0, %c0_i32_1 : i32, i32, i32
  }
  func.func @transform_5(%arg0: i32, %arg1: i32) -> (i32, i32, i32) {
    %c0_i32 = arith.constant 0 : i32
    %c0_i32_0 = arith.constant 0 : i32
    %c0_i32_1 = arith.constant 0 : i32
    %c0_i32_2 = arith.constant 0 : i32
    return %c0_i32, %c0_i32_0, %c0_i32_1 : i32, i32, i32
  }
  func.func @transform_6(%arg0: i32, %arg1: i32) -> (i32, i32) {
    %c0_i32 = arith.constant 0 : i32
    %c0_i32_0 = arith.constant 0 : i32
    %c0_i32_1 = arith.constant 0 : i32
    return %c0_i32, %c0_i32_0 : i32, i32
  }
  func.func @transform_7(%arg0: i32, %arg1: i32) -> (i32, i32, i32) {
    %c0_i32 = arith.constant 0 : i32
    %c0_i32_0 = arith.constant 0 : i32
    return %arg0, %arg1, %c0_i32 : i32, i32, i32
  }
  func.func @transform_8(%arg0: i32, %arg1: i32) -> (i32, i32, i32) {
    %c0_i32 = arith.constant 0 : i32
    %c0_i32_0 = arith.constant 0 : i32
    return %arg0, %arg1, %c0_i32 : i32, i32, i32
  }
}

</mosaic_0001>

<bundles_post_ra>
// kernel: tpu_custom_call.1
= control target key start
LH: loop header
LB: loop body
LE: loop exit
PB: predicated region body
PF: predicated region fallthrough
CT: control target
= control target key end

     0   :  { %s2413_s0 = inlined_call_operand.hbm [shape: bf16[2,8,32], index: 0, kind: input, shape index: {}]   ;;  %s2414_s1 = inlined_call_operand.hbm [shape: bf16[2,8,32], index: 1, kind: input, shape index: {}]   ;;  %s2415_s2 = inlined_call_operand.hbm [shape: bf16[2,8,32], index: 2, kind: input, shape index: {}]   ;;  %s2416_s3 = inlined_call_operand.hbm [shape: bf16[6,32,32], index: 3, kind: input, shape index: {}]   ;;  %s2417_s4 = inlined_call_operand.vmem [shape: f32[6,1,32], index: 4, kind: input, shape index: {}]   ;;  %s2418_s5 = inlined_call_operand.hbm [shape: bf16[2,32,32], index: 5, kind: input, shape index: {}]   ;;  %s2419_s6 = inlined_call_operand.vmem [shape: f32[1,32], index: 6, kind: input, shape index: {}]   ;;  %s2420_s7 = inlined_call_operand.hbm [shape: f32[2,8,32], index: 7, kind: output, shape index: {0}]   ;;  %s2421_s8 = inlined_call_operand.hbm [shape: f32[2,8,8], index: 8, kind: output, shape index: {1}]  }
   0x1   :  { %2438 = sst [smem:[#allocation27_spill]] %s2414_s1 }
   0x2   :  { %2439 = sst [smem:[#allocation28_spill]] %s2416_s3 }
   0x3   :  { %2440 = sst [smem:[#allocation29_spill]] %s2419_s6 }
   0x4   :  { %2441 = sst [smem:[#allocation30_spill]] %s2420_s7 }
   0x5   :  { %14 = vsyncpa [#allocation5], 0 }
   0x6   :  { %16 = vsyncpa [#allocation5 + $0x1], 0 }
   0x7   :  { %17 = vsyncpa [#allocation8], 0 }
   0x8   :  { %19 = vsyncpa [#allocation8 + $0x1], 0 }
   0x9   :  { %20 = vsyncpa [#allocation11], 0 }
   0xa   :  { %21 = vsyncpa [#allocation6], 0 }
   0xb   :  { %23 = vsyncpa [#allocation6 + $0x1], 0 }
   0xc   :  { %24 = vsyncpa [#allocation15], 0 }
   0xd   :  { %26 = vsyncpa [#allocation15 + $0x1], 0  ;;  %s2052_s27 = smov 0   ;;  %s2054_s28 = smov 0  }
   0xe   :  { %s2056_s29 = smov 0   ;;  %s2058_s30 = smov 0  }
   0xf   :  { %s2060_s9 = smov 0   ;;  %s2062_s10 = smov 0  }
  0x10 LB: > { %2442 = sst [smem:[#allocation21_spill]] %s1974_s27  ;;  %s2083_s11 = sadd.s32 4294967295, %s1994_s10   ;;  %s1994_s10 = sphi %s2062_s10, %s32_s10   ;;  %s1990_s9 = sphi %s2060_s9, %s2477_s9   ;;  %s1986_s30 = sphi %s2058_s30, %s2476_s30   ;;  %s1982_s29 = sphi %s2056_s29, %s2480_s29   ;;  %s1978_s28 = sphi %s2054_s28, %s2479_s28   ;;  %s1974_s27 = sphi %s2052_s27, %s2478_s27  }
  0x11   : > { %2443 = sst [smem:[#allocation22_spill]] %s1990_s9  ;;  %s1429_s12 = sadd.s32 4294967294, %s1994_s10  }
  0x12   : > { %2444 = sst [smem:[#allocation23_spill]] %s1994_s10  ;;  %p66_p0 = scmp.ne.s32.totalorder %s1978_s28, %s1974_s27 }
  0x13   : > { %p2431_p1 = scmp.eq.s32.totalorder %s2083_s11, 0  ;;  %p234_p3 = scmp.eq.s32.totalorder %s1429_s12, 1 }
  0x14   : > { %p1430_p5 = scmp.ge.s32.totalorder %s1994_s10, 1  ;;  %p269_p7 = scmp.lt.s32.totalorder %s1994_s10, 3 }
  0x15   : > { %p2092_p4 = por %p2431_p1, %p66_p0  ;;  %p2097_p6 = por %p234_p3, %p66_p0 }
  0x16   : > { %p2102_p8 = pnand %p1430_p5, %p269_p7  ;;  %s1996_s16 = smov [#allocation10]  }
  0x17   : > { %s2445_s13 = scalar_select %p2092_p4, 1, 0 }
  0x18   : > { %s2446_s14 = scalar_select %p2097_p6, 1, 0 }
  0x19   : > { %s2448_s15 = scalar_select %p2102_p8, 1, 0 }
  0x1a   : > { %2447 = sst [smem:[#allocation24_spill]] %s2446_s14  ;;  %s281_s17 = sshll.u32 %s1996_s16, 4  ;;  %s282_s17 = int_to_ptr.vmem [resolvable:$true] %s281_s17 }
  0x1b   : > { %p1632_p9 = pneg %p2102_p8  ;;  %s44_s19 = sadd.s32 1, %s1990_s9 }
  0x1c   : > { %s1751_s20 = scalar_lea.vmem %s282_s17, 1536  ;;  %p1759_p5 = scmp.lt.s32.totalorder %s282_s17, %s282_s17 }
  0x1d   : > { %p2111_p11 = pnand %p1632_p9, %p2431_p1  ;;  %p1752_p13 = scmp.ne.s32.totalorder %s282_s17, %s1751_s20 }
  0x1e   : > { %p1760_p7 = scmp.lt.s32.totalorder %s1751_s20, %s1751_s20 }
  0x1f   : > { %p2432_p12 = pneg %p2111_p11 }
  0x20   : > { %p1761_p2 = por %p1760_p7, %p1759_p5 }
  0x21   : > { %p1754_p0 = pnand %p1752_p13, %p2432_p12 }
  0x23   : > { %p1755_p3 = pneg %p1754_p0 }
  0x25   : > { %p1762_p10 = pnand %p1761_p2, %p1755_p3 }
  0x27   : > { %1765 = shalt.err (!%p1762_p10)
}
  0x28   : > { %s2422_s21 = smov 64   ;;  %s2423_s22 = smov 4  }
  0x29   : > { %s2450_s3 = sld [smem:[#allocation28_spill]]  ;;  %p46_p2 = scmp.ge.s32.totalorder %s44_s19, 2 }
  0x2a   : > { %s53_s25 = sadd.s32 1, %s1982_s29  ;;  %p60_p9 = scmp.ne.s32.totalorder %s1982_s29, %s1978_s28 }
  0x2b   : > { %p61_p10 = scmp.eq.s32.totalorder %s1994_s10, 0  ;;  %s2482_s19 = smov (%p46_p2, %s44_s19), 0 }
  0x2c   : > { %2451 = sst [smem:[#allocation25_spill]] %s2482_s19  ;;  %p2452_p0 = scmp.eq.s32.totalorder %s2083_s11, 1 }
  0x2d   : > { %p62_p13 = por %p61_p10, %p60_p9  ;;  %s48_s12 = ssub.s32 %s1990_s9, %s2482_s19 }
  0x2e   : > { %p2137_p3 = por %p2452_p0, %p60_p9  ;;  %p1658_p5 = scmp.lt.s32.totalorder %s1994_s10, 2 }
  0x2f   : > { %1635 = dma.hbm_to_vmem [thread:$0]  (!%p2111_p11), %s2450_s3, 1536, %s282_s17, [#allocation11], %s2422_s21, %s2422_s21, %s2423_s22  }
  0x30   : > { %s2453_s26 = scalar_select %p2137_p3, 1, 0 }
  0x31   : > { %p51_p7 = scmp.eq.s32.totalorder %s48_s12, 0  ;;  %s2425_s16 = sand.u32 1, %s1982_s29  }
  0x32   : > { %s2147_s17 = sshll.u32 %s2425_s16, 2  ;;  %s2150_s20 = sshll.u32 %s1990_s9, 6 }
  0x33   : > { %s2153_s23 = scalar_select %p51_p7, %s1982_s29, %s53_s25  }
  0x34   : > { %p2155_p2 = pnand %p1658_p5, %p62_p13  ;;  %s333_s21 = sand.u32 1, %s1994_s10  }
  0x35   : > { %2454 = sst [smem:[#allocation26_spill]] %s2153_s23  ;;  %s337_s19 = scalar_lea.vmem [#allocation7], %s2147_s17 }
  0x36   : > { %s2456_s1 = sld [smem:[#allocation27_spill]]  ;;  %s344_s16 = sshll.u32 %s337_s19, 4  ;;  %s345_s16 = int_to_ptr.vmem [resolvable:$true] %s344_s16 }
  0x37   : > { %s1999_s14 = smov [#allocation12]   ;;  %s2165_s27 = scalar_lea.sflag [#allocation8], %s333_s21 }
  0x38   : > { %s297_s9 = sshll.u32 %s1999_s14, 4  ;;  %p2433_p9 = pneg %p2155_p2  ;;  %s298_s9 = int_to_ptr.vmem [resolvable:$true] %s297_s9 }
  0x39   : > { %s1779_s25 = scalar_lea.vmem %s345_s16, 64  ;;  %s2000_s23 = smov [#allocation7]  }
  0x3a   : > { %p1780_p10 = scmp.ne.s32.totalorder %s345_s16, %s1779_s25  ;;  %s1784_s10 = sshll.u32 %s2000_s23, 4  ;;  %s1785_s10 = int_to_ptr.vmem [resolvable:$false] %s1784_s10 }
  0x3b   : > { %s1786_s3 = scalar_lea.vmem %s1785_s10, 128  ;;  %p1787_p5 = scmp.lt.s32.totalorder %s345_s16, %s1785_s10 }
  0x3c   : > { %s342_s12 = scalar_lea.hbm %s2456_s1, %s2150_s20  ;;  %p1782_p13 = pnand %p1780_p10, %p2433_p9 }
  0x3d   : > { %p1788_p7 = scmp.lt.s32.totalorder %s1786_s3, %s1779_s25 }
  0x3e   : > { %p1783_p0 = pneg %p1782_p13 }
  0x3f   : > { %p1789_p1 = por %p1788_p7, %p1787_p5 }
  0x41   : > { %p1790_p12 = pnand %p1789_p1, %p1783_p0 }
  0x43   : > { %1793 = shalt.err (!%p1790_p12)
}
  0x44   : > { %1645 = dma.hbm_to_vmem [thread:$0]  (!%p2155_p2), %s342_s12, 64, %s345_s16, %s2165_s27  }
  0x45   : > { %s1805_s14 = scalar_lea.vmem %s298_s9, 512  ;;  %p2457_p10 = pneg %p2111_p11 }
  0x46   : > { %p1806_p6 = scmp.ne.s32.totalorder %s298_s9, %s1805_s14  ;;  %p1813_p3 = scmp.lt.s32.totalorder %s298_s9, %s298_s9 }
  0x47   : > { %p1814_p4 = scmp.lt.s32.totalorder %s1805_s14, %s1805_s14 }
  0x48   : > { %p1808_p13 = pnand %p1806_p6, %p2457_p10 }
  0x49   : > { %p1815_p8 = por %p1814_p4, %p1813_p3 }
  0x4a   : > { %p1809_p9 = pneg %p1808_p13 }
  0x4c   : > { %p1816_p5 = pnand %p1815_p8, %p1809_p9 }
  0x4e   : > { %1819 = shalt.err (!%p1816_p5)
}
  0x4f   : > { %s2458_s10 = smov 4   ;;  %s2459_s19 = smov 64  }
  0x50   : > { %1638 = dma.hbm_to_vmem [thread:$0]  (!%p2111_p11), %s2418_s5, 512, %s298_s9, [#allocation11], %s2459_s19, %s2459_s19, %s2458_s10  }
  0x51   : > { %s324_s12 = scalar_lea.hbm %s2413_s0, %s2150_s20  ;;  %s318_s25 = scalar_lea.vmem [#allocation4], %s2147_s17 }
  0x52   : > { %s326_s3 = sshll.u32 %s318_s25, 4  ;;  %s360_s1 = scalar_lea.hbm %s2415_s2, %s2150_s20  ;;  %s327_s3 = int_to_ptr.vmem [resolvable:$true] %s326_s3 }
  0x53   : > { %s2460_s7 = sand.u32 1, %s1982_s29   ;;  %s1833_s21 = scalar_lea.vmem %s327_s3, 64 }
  0x54   : > { %s315_s6 = scalar_lea.sflag [#allocation5], %s2460_s7  ;;  %p1834_p1 = scmp.ne.s32.totalorder %s327_s3, %s1833_s21 }
  0x55   : > { %p2461_p4 = pneg %p2155_p2  ;;  %s2001_s9 = smov [#allocation4]  }
  0x56   : > { %s1838_s10 = sshll.u32 %s2001_s9, 4  ;;  %s1839_s10 = int_to_ptr.vmem [resolvable:$false] %s1838_s10 }
  0x57   : > { %p1836_p6 = pnand %p1834_p1, %p2461_p4  ;;  %s1840_s19 = scalar_lea.vmem %s1839_s10, 128 }
  0x58   : > { %p1841_p11 = scmp.lt.s32.totalorder %s327_s3, %s1839_s10  ;;  %p1842_p12 = scmp.lt.s32.totalorder %s1840_s19, %s1833_s21 }
  0x59   : > { %p1837_p8 = pneg %p1836_p6 }
  0x5a   : > { %p1843_p3 = por %p1842_p12, %p1841_p11 }
  0x5c   : > { %p1844_p9 = pnand %p1843_p3, %p1837_p8 }
  0x5e   : > { %1847 = shalt.err (!%p1844_p9)
}
  0x5f   : > { %1642 = dma.hbm_to_vmem [thread:$0]  (!%p2155_p2), %s324_s12, 64, %s327_s3, %s315_s6  }
  0x60   : > { %s355_s7 = scalar_lea.vmem [#allocation9], %s2147_s17  ;;  %p2462_p7 = pmov %p2461_p4 }
  0x61   : > { %s362_s22 = sshll.u32 %s355_s7, 4  ;;  %s2002_s23 = smov [#allocation9]   ;;  %s363_s22 = int_to_ptr.vmem [resolvable:$true] %s362_s22 }
  0x62   : > { %s1861_s16 = scalar_lea.vmem %s363_s22, 64  ;;  %s1866_s25 = sshll.u32 %s2002_s23, 4  ;;  %s1867_s25 = int_to_ptr.vmem [resolvable:$false] %s1866_s25 }
  0x63   : > { %p1862_p0 = scmp.ne.s32.totalorder %s363_s22, %s1861_s16  ;;  %s1868_s18 = scalar_lea.vmem %s1867_s25, 128 }
  0x64   : > { %p1869_p5 = scmp.lt.s32.totalorder %s363_s22, %s1867_s25  ;;  %p1870_p1 = scmp.lt.s32.totalorder %s1868_s18, %s1861_s16 }
  0x65   : > { %p1864_p10 = pnand %p1862_p0, %p2462_p7 }
  0x66   : > { %p1871_p4 = por %p1870_p1, %p1869_p5 }
  0x67   : > { %p1865_p13 = pneg %p1864_p10 }
  0x69   : > { %p1872_p6 = pnand %p1871_p4, %p1865_p13 }
  0x6b   : > { %1875 = shalt.err (!%p1872_p6)
}
  0x6c   : > { %1648 = dma.hbm_to_vmem [thread:$0]  (!%p2155_p2), %s360_s1, 64, %s363_s22, %s2165_s27  }
  0x6d   : > { %p2463_p8 = scmp.ne.s32.totalorder %s2448_s15, 0 }
  0x6e   : > { %s2217_s12 = sand.u32 (!%p2463_p8), 1, %s1978_s28   ;;  %p2464_p11 = scmp.ne.s32.totalorder (!%p2463_p8), %s2445_s13, 0 }
  0x6f   : > { %371 = sbr.rel (%p2463_p8) target bundleno = 1774 (0x6ee), region = 48  ;;  %s2220_s3 = sshll.u32 (!%p2463_p8), %s2217_s12, 2 }
  0x70   : > { %s374_s24 = scalar_lea.sflag (!%p2463_p8), [#allocation5], %s2217_s12  ;;  %s377_s14 = scalar_lea.vmem (!%p2463_p8), [#allocation4], %s2220_s3 }
  0x74   : > { %1953 = dma.done.wait (%p2464_p11), %s374_s24, 64  }
  0x75   : > { %1955 = vsyncadd (%p2464_p11), %s374_s24, 4294967232  ;;  %s382_s1 = sand.u32 1, %s2083_s11   ;;  %s386_s15 = scalar_lea.vmem [#allocation7], %s2220_s3 }
  0x76   : > { %s383_s27 = scalar_lea.sflag [#allocation8], %s382_s1 }
  0x77   : > { %1957 = dma.done.wait (%p2464_p11), %s383_s27, 128  }
  0x78   : > { %1959 = vsyncadd (%p2464_p11), %s383_s27, 4294967168  ;;  %s395_s20 = scalar_lea.vmem [#allocation9], %s2220_s3  ;;  %p2465_p2 = scmp.eq.s32.totalorder %s2083_s11, 0 }
  0x7a   : > { %1961 = dma.done.wait (%p2465_p2), [#allocation11], 2048   ;;  %p2466_p12 = pmov %p2465_p2 }
  0x7b   : > { %v2003_v0 = vmov 0.0   ;;  %vm2004_vm0 = vmmov 0   ;;  %v1716_v1 = vld [vmem:[#allocation10 + $0x28] sm:$0xff]   ;;  %v1717_v2 = vld [vmem:[#allocation10 + $0x20] sm:$0xff]   ;;  %v456_v3 = vld [vmem:[%s386_s15] sm:$0xf] }
  0x7c   : > { %1963 = vsyncadd (%p2466_p12), [#allocation11], 4294965248  ;;  %1526 = vmatprep.subr.bf16.mxu0 %v2003_v0  ;;  %1530 = vmatprep.mubr.msk.bf16.mxu0 %vm2004_vm0, %v2003_v0  ;;  %vm483_vm1 = vcmask 261120   ;;  %v1718_v4 = vld [vmem:[#allocation10 + $0x38] sm:$0xff]   ;;  %v1722_v5 = vld [vmem:[#allocation10 + $0x48] sm:$0xff]   ;;  %vm528_vm2 = vcmask 257024  }
  0x7d   : > { %1534 = vmatprep.subr.bf16.mxu1 %v2003_v0  ;;  %1538 = vmatprep.mubr.msk.bf16.mxu1 %vm2004_vm0, %v2003_v0  ;;  %v1719_v6 = vld [vmem:[#allocation10 + $0x30] sm:$0xff]   ;;  %v1723_v7 = vld [vmem:[#allocation10 + $0x40] sm:$0xff]   ;;  %v1720_v8 = vld [vmem:[#allocation10 + $0x8] sm:$0xff]   ;;  %vm869_vm3 = vcmask 1043456   ;;  %vm852_vm4 = vcmask 64512   ;;  %s1446_s6 = sshll.u32 %s2217_s12, 3 }
  0x7e   : > { %1527 = vmatpush3.bf16.msra.mxu0 %v1716_v1  ;;  %1535 = vmatpush3.bf16.msra.mxu1 %v1722_v5  ;;  %v1721_v9 = vld [vmem:[#allocation10] sm:$0xff]   ;;  %v2260_v10 = vld [vmem:[%s377_s14] sm:$0xf]  ;;  %v457_v11 = vld [vmem:[%s395_s20] sm:$0xf]  ;;  %s450_s17 = scalar_lea.vmem [#allocation14], %s1446_s6 }
  0x7f   : > { %1528 = vmatprep.subr.bf16.mxu0 %v2003_v0  ;;  %1536 = vmatprep.subr.bf16.mxu1 %v2003_v0  ;;  %v1724_v12 = vld [vmem:[#allocation10 + $0x58] sm:$0xff]   ;;  %v1725_v13 = vld [vmem:[#allocation10 + $0x50] sm:$0xff]   ;;  %s1490_s3 = sshll.u32 %s1986_s30, 7  ;;  %s1253_s27 = sshll.u32 %s450_s17, 4  ;;  %s1254_s27 = int_to_ptr.vmem [resolvable:$true] %s1253_s27 }
  0x80   : > { %v1449_v14 = vld [vmem:[%s2417_s4 + $0x2] ss:$0 sm:$0xff]  ;;  %v1459_v21 = vld [vmem:[%s2417_s4 + $0x3] ss:$0 sm:$0xff]  ;;  %v1468_v30 = vld [vmem:[%s2417_s4] ss:$0 sm:$0xff]  ;;  %s1251_s1 = scalar_lea.hbm %s2421_s8, %s1490_s3 }
  0x81   : > { %v1726_v34 = vld [vmem:[#allocation10 + $0x18] sm:$0xff]   ;;  %v1727_v54 = vld [vmem:[#allocation10 + $0x10] sm:$0xff]   ;;  %s1225_s15 = scalar_lea.sflag [#allocation15], %s2217_s12  ;;  %s1876_s20 = scalar_lea.vmem %s1254_s27, 128 }
  0x82   : > { %1529 = vmatpush3.bf16.msra.mxu0 %v1717_v2  ;;  %1537 = vmatpush3.bf16.msra.mxu1 %v1723_v7  ;;  %v1454_v38 = vld [vmem:[%s2417_s4 + $0x4] ss:$0 sm:$0xff]  ;;  %v1464_v45 = vld [vmem:[%s2417_s4 + $0x5] ss:$0 sm:$0xff]  ;;  %p1877_p3 = scmp.ne.s32.totalorder %s1254_s27, %s1876_s20  ;;  %p2467_p9 = scmp.ne.s32.totalorder %s2453_s26, 0 }
  0x83   : > { %1542 = vmatprep.subr.bf16.mxu0 %v2003_v0  ;;  %1550 = vmatprep.subr.bf16.mxu1 %v2003_v0  ;;  %s2005_s11 = smov [#allocation14]  }
  0x84   : > { %p1878_p0 = pnand %p1877_p3, %p2467_p9  ;;  %s1880_s13 = sshll.u32 %s2005_s11, 4  ;;  %s1881_s13 = int_to_ptr.vmem [resolvable:$false] %s1880_s13 }
  0x85   : > { %1531 = vmatmul.mubr.msk.bf16.vlgmr.msra.gmra.mxu0 %vm483_vm1, %v456_v3  ;;  %1539 = vmatmul.mubr.msk.bf16.vlgmr.msra.gmra.mxu1 %vm483_vm1, %v457_v11  ;;  %s1882_s21 = scalar_lea.vmem %s1881_s13, 256  ;;  %p1883_p10 = scmp.lt.s32.totalorder %s1254_s27, %s1881_s13 }
  0x86   : > { %1543 = vmatpush3.bf16.msra.mxu0 %v1718_v4  ;;  %1546 = vmatprep.mubr.msk.bf16.mxu0 %vm2004_vm0, %v2003_v0  ;;  %p1879_p7 = pneg %p1878_p0  ;;  %p1884_p13 = scmp.lt.s32.totalorder %s1882_s21, %s1876_s20 }
  0x87   : > { %1544 = vmatprep.subr.bf16.mxu0 %v2003_v0  ;;  %1551 = vmatpush3.bf16.msra.mxu1 %v1724_v12 }
  0x88   : > { %1554 = vmatprep.mubr.msk.bf16.mxu1 %vm2004_vm0, %v2003_v0  ;;  %1552 = vmatprep.subr.bf16.mxu1 %v2003_v0  ;;  %p1885_p5 = por %p1884_p13, %p1883_p10 }
  0x8a   : > { %1545 = vmatpush3.bf16.msra.mxu0 %v1719_v6  ;;  %p1886_p1 = pnand %p1885_p5, %p1879_p7 }
  0x8b   : > { %1558 = vmatprep.subr.bf16.mxu0 %v2003_v0  ;;  %1553 = vmatpush3.bf16.msra.mxu1 %v1725_v13 }
  0x8c   : > { %1566 = vmatprep.subr.bf16.mxu1 %v2003_v0 }
  0x8d   : > { %1547 = vmatmul.mubr.msk.bf16.vlgmr.msra.gmra.mxu0 %vm483_vm1, %v456_v3 }
  0x8e   : > { %1559 = vmatpush3.bf16.msra.mxu0 %v1720_v8  ;;  %1562 = vmatprep.mubr.msk.bf16.mxu0 %vm2004_vm0, %v2003_v0 }
  0x8f   : > { %1560 = vmatprep.subr.bf16.mxu0 %v2003_v0  ;;  %1555 = vmatmul.mubr.msk.bf16.vlgmr.msra.gmra.mxu1 %vm483_vm1, %v457_v11  ;;  %v1475_v11 = vld [vmem:[%s2417_s4 + $0x1] ss:$0 sm:$0xff] }
  0x90   : > { %1568 = vmatprep.mubr.msk.bf16.mxu1 %vm2004_vm0, %v2003_v0 }
  0x92   : > { %1561 = vmatpush3.bf16.msra.mxu0 %v1721_v9 }
  0x93   : > { %1572 = vmatprep.subr.bf16.mxu0 %v2003_v0 }
  0x95   : > { %1563 = vmatmul.mubr.msk.bf16.vlgmr.msra.gmra.mxu0 %vm483_vm1, %v2260_v10 }
  0x96   : > { %1574 = vmatprep.mubr.msk.bf16.mxu0 %vm2004_vm0, %v2003_v0 }
 0x145   : > { %v521_v15 = vpop.f32.mrf.mxu0  ;;  %v592_v39 = vpop.f32.mrf.mxu1 }
 0x146   : > { %v522_v16 = vadd.f32 %v1449_v14, %v521_v15  ;;  %v593_v40 = vadd.f32 %v1454_v38, %v592_v39  ;;  %v1729_v38 = vld [vmem:[#allocation12] sm:$0xff]  }
 0x147   : > { %v1532_v17 = vpop.f32.mrf.mxu0  ;;  %v1540_v41 = vpop.f32.mrf.mxu1 }
 0x148   : > { %v527_v18 = vpack.c.bf16 %v522_v16, %v522_v16  ;;  %v598_v42 = vpack.c.bf16 %v593_v40, %v593_v40  ;;  %v1731_v40 = vld [vmem:[#allocation12 + $0x10] sm:$0xff]  }
 0x149   : > { %v524_v19 = vpop.f32.mrf.mxu0  ;;  %v595_v43 = vpop.f32.mrf.mxu1 }
 0x14a   : > { %529 = vst.msk [vmem:[#allocation2] sm:$0xf] %vm528_vm2, %v527_v18  ;;  %599 = vst.msk [vmem:[#allocation3] sm:$0xf] %vm528_vm2, %v598_v42 }
 0x14b   : > { %v1533_v20 = vpop.f32.mrf.mxu0  ;;  %v1541_v44 = vpop.f32.mrf.mxu1 }
 0x14d   : > { %v659_v22 = vpop.f32.mrf.mxu0 }
 0x14e   : > { %v660_v23 = vadd.f32 %v1459_v21, %v659_v22 }
 0x14f   : > { %v1548_v24 = vpop.f32.mrf.mxu0  ;;  %v727_v46 = vpop.f32.mrf.mxu1 }
 0x150   : > { %v665_v25 = vpack.c.bf16 %v660_v23, %v660_v23  ;;  %v728_v47 = vadd.f32 %v1464_v45, %v727_v46 }
 0x151   : > { %v662_v26 = vpop.f32.mrf.mxu0  ;;  %v805_v27 = vld [vmem:[#allocation2] sm:$0xf]  ;;  %v1556_v48 = vpop.f32.mrf.mxu1  ;;  %v865_v51 = vld [vmem:[#allocation3] sm:$0xf] }
 0x152   : > { %667 = vst.msk [vmem:[#allocation2 + $0x4] sm:$0xf] %vm528_vm2, %v665_v25  ;;  %v810_v28 = vsel %vm483_vm1, %v805_v27, 0  ;;  %v733_v49 = vpack.c.bf16 %v728_v47, %v728_v47  ;;  %v871_v52 = vsel %vm869_vm3, %v865_v51, 0 }
 0x153   : > { %v1549_v29 = vpop.f32.mrf.mxu0  ;;  %1567 = vmatpush3.bf16.xpose.msra.mxu1 %v810_v28  ;;  %v730_v50 = vpop.f32.mrf.mxu1  ;;  %1573 = vmatpush3.bf16.msra.mxu0 %v871_v52 }
 0x154   : > { %1578 = vmatprep.subr.bf16.mxu1 %v2003_v0  ;;  %735 = vst.msk [vmem:[#allocation3 + $0x4] sm:$0xf] %vm528_vm2, %v733_v49  ;;  %1586 = vmatprep.subr.bf16.mxu0 %v2003_v0 }
 0x155   : > { %v798_v31 = vpop.f32.mrf.mxu0  ;;  %v1557_v53 = vpop.f32.mrf.mxu1 }
 0x156   : > { %v799_v32 = vadd.f32 %v1468_v30, %v798_v31  ;;  %v1730_v31 = vld [vmem:[#allocation12 + $0x18] sm:$0xff]  }
 0x157   : > { %v1564_v33 = vpop.f32.mrf.mxu0 }
 0x158   : > { %v804_v35 = vpack.c.bf16 %v799_v32, %v799_v32 }
 0x159   : > { %v801_v36 = vpop.f32.mrf.mxu0  ;;  %v985_v12 = vld [vmem:[#allocation2 + $0x4] sm:$0xf] }
 0x15a   : > { %1569 = vmatmul.mubr.msk.bf16.vlgmr.msra.gmra.mxu1 %vm483_vm1, %v804_v35  ;;  %v990_v15 = vsel %vm483_vm1, %v985_v12, 0  ;;  %v1728_v35 = vld [vmem:[#allocation12 + $0x8] sm:$0xff]  }
 0x15b   : > { %v1565_v37 = vpop.f32.mrf.mxu0  ;;  %1579 = vmatpush3.bf16.msra.mxu1 %v1726_v34  ;;  %1582 = vmatprep.mubr.msk.bf16.mxu1 %vm2004_vm0, %v2003_v0  ;;  %v1046_v55 = vld [vmem:[#allocation3 + $0x4] sm:$0xf] }
 0x15c   : > { %1580 = vmatprep.subr.bf16.mxu1 %v2003_v0  ;;  %v1051_v56 = vsel %vm869_vm3, %v1046_v55, 0 }
 0x15f   : > { %1581 = vmatpush3.bf16.msra.mxu1 %v1727_v54 }
 0x160   : > { %1592 = vmatprep.subr.bf16.mxu1 %v2003_v0 }
 0x162   : > { %1583 = vmatmul.mubr.msk.bf16.vlgmr.msra.gmra.mxu1 %vm483_vm1, %v2260_v10 }
 0x163   : > { %1593 = vmatpush3.bf16.msra.mxu1 %v1051_v56  ;;  %1594 = vmatprep.mubr.msk.bf16.mxu1 %vm2004_vm0, %v2003_v0 }
 0x164   : > { %1606 = vmatprep.subr.bf16.mxu1 %v2003_v0 }
 0x21a   : > { %v846_v57 = vpop.f32.mrf.mxu1 }
 0x21b   : > { %v853_v58 = vsel %vm852_vm4, %v846_v57, -inf }
 0x21c   : > { %854 = vmax.xlane.f32.xlu0 %v853_v58  ;;  %v1570_v59 = vpop.f32.mrf.mxu1 }
 0x21e   : > { %v849_v60 = vpop.f32.mrf.mxu1 }
 0x220   : > { %v1571_v61 = vpop.f32.mrf.mxu1 }
 0x222   : > { %v977_v4 = vpop.f32.mrf.mxu1 }
 0x223   : > { %v978_v14 = vadd.f32 %v1475_v11, %v977_v4 }
 0x224   : > { %v1584_v5 = vpop.f32.mrf.mxu1 }
 0x225   : > { %v983_v16 = vpack.c.bf16 %v978_v14, %v978_v14 }
 0x226   : > { %v980_v6 = vpop.f32.mrf.mxu1 }
 0x228   : > { %v1585_v7 = vpop.f32.mrf.mxu1 }
 0x2a5   : > { %v855_v62 = vpop.xlane.xlu0 %854 }
 0x2a6   : > { %v856_v63 = vsub.f32 %v846_v57, %v855_v62 }
 0x2a8   : > { %v857_v1 = vmul.f32 1.442695, %v856_v63 }
 0x2aa   : > { %1732 = vpow2.f32 %v857_v1 }
 0x2b7   : > { %v1733_v2 = vpop.eup %1732 }
 0x2b8   : > { %v859_v3 = vsel %vm852_vm4, %v1733_v2, 0.0 }
 0x2b9   : > { %860 = vadd.xlane.f32.xlu0 %v859_v3 }
 0x342   : > { %v861_v8 = vpop.xlane.xlu0 %860 }
 0x343   : > { %1734 = vrcp.f32 %v861_v8 }
 0x350   : > { %v1735_v9 = vpop.eup %1734 }
 0x351   : > { %v863_v10 = vmul.f32 %v1735_v9, %v1733_v2 }
 0x353   : > { %v864_v13 = vpack.c.bf16 %v863_v10, %v863_v10 }
 0x355   : > { %1575 = vmatmul.mubr.msk.bf16.vlgmr.msra.gmra.mxu0 %vm852_vm4, %v864_v13 }
 0x356   : > { %1587 = vmatpush3.bf16.xpose.msra.mxu0 %v990_v15  ;;  %1588 = vmatprep.mubr.msk.bf16.mxu0 %vm2004_vm0, %v2003_v0 }
 0x357   : > { %1598 = vmatprep.subr.bf16.mxu0 %v2003_v0 }
 0x35d   : > { %1589 = vmatmul.mubr.msk.bf16.vlgmr.msra.gmra.mxu0 %vm483_vm1, %v983_v16 }
 0x35e   : > { %1602 = vmatprep.mubr.msk.bf16.mxu0 %vm2004_vm0, %v2003_v0  ;;  %1599 = vmatpush3.bf16.msra.mxu0 %v1730_v31 }
 0x35f   : > { %1600 = vmatprep.subr.bf16.mxu0 %v2003_v0 }
 0x362   : > { %1601 = vmatpush3.bf16.msra.mxu0 %v1731_v40 }
 0x415   : > { %v907_v17 = vpop.f32.mrf.mxu0 }
 0x416   : > { %v913_v39 = vpack.c.bf16 %v907_v17, %v907_v17 }
 0x417   : > { %v1576_v18 = vpop.f32.mrf.mxu0 }
 0x419   : > { %v910_v19 = vpop.f32.mrf.mxu0 }
 0x41b   : > { %v1577_v20 = vpop.f32.mrf.mxu0 }
 0x41d   : > { %v1026_v21 = vpop.f32.mrf.mxu0 }
 0x41e   : > { %v1032_v22 = vsel %vm852_vm4, %v1026_v21, -inf }
 0x41f   : > { %1033 = vmax.xlane.f32.xlu1 %v1032_v22  ;;  %v1590_v23 = vpop.f32.mrf.mxu0 }
 0x421   : > { %v1029_v24 = vpop.f32.mrf.mxu0 }
 0x423   : > { %v1591_v25 = vpop.f32.mrf.mxu0 }
 0x4a8   : > { %v1034_v26 = vpop.xlane.xlu1 %1033 }
 0x4a9   : > { %v1035_v27 = vsub.f32 %v1026_v21, %v1034_v26 }
 0x4ab   : > { %v1036_v28 = vmul.f32 1.442695, %v1035_v27 }
 0x4ad   : > { %1736 = vpow2.f32 %v1036_v28 }
 0x4ba   : > { %v1737_v29 = vpop.eup %1736 }
 0x4bb   : > { %v1038_v30 = vsel %vm852_vm4, %v1737_v29, 0.0 }
 0x4bc   : > { %1039 = vadd.xlane.f32.xlu1 %v1038_v30 }
 0x545   : > { %v1040_v32 = vpop.xlane.xlu1 %1039 }
 0x546   : > { %1738 = vrcp.f32 %v1040_v32 }
 0x553   : > { %v1739_v33 = vpop.eup %1738 }
 0x554   : > { %v1042_v34 = vmul.f32 %v1739_v33, %v1737_v29 }
 0x556   : > { %v1044_v36 = vpack.c.bf16 %v1042_v34, %v1042_v34  ;;  %v1043_v37 = vadd.f32 %v1042_v34, %v863_v10 }
 0x558   : > { %1595 = vmatmul.mubr.msk.bf16.vlgmr.msra.gmra.mxu1 %vm852_vm4, %v1044_v36  ;;  %1218 = vst.msk [vmem:[%s450_s17] sm:$0xff] %vm852_vm4, %v1043_v37 }
 0x559   : > { %1607 = vmatpush3.bf16.msra.mxu1 %v1728_v35  ;;  %1610 = vmatprep.mubr.msk.bf16.mxu1 %vm2004_vm0, %v2003_v0 }
 0x55a   : > { %1608 = vmatprep.subr.bf16.mxu1 %v2003_v0 }
 0x55d   : > { %1609 = vmatpush3.bf16.msra.mxu1 %v1729_v38 }
 0x560   : > { %1611 = vmatmul.mubr.msk.bf16.vlgmr.msra.gmra.mxu1 %vm483_vm1, %v913_v39 }
 0x618   : > { %v1087_v41 = vpop.f32.mrf.mxu1 }
 0x619   : > { %v1093_v42 = vpack.c.bf16 %v1087_v41, %v1087_v41 }
 0x61a   : > { %v1596_v43 = vpop.f32.mrf.mxu1 }
 0x61b   : > { %1603 = vmatmul.mubr.msk.bf16.vlgmr.msra.gmra.mxu0 %vm483_vm1, %v1093_v42 }
 0x61c   : > { %v1090_v44 = vpop.f32.mrf.mxu1 }
 0x61e   : > { %v1597_v45 = vpop.f32.mrf.mxu1 }
 0x620   : > { %v1203_v46 = vpop.f32.mrf.mxu1 }
 0x622   : > { %v1612_v47 = vpop.f32.mrf.mxu1 }
 0x624   : > { %v1206_v0 = vpop.f32.mrf.mxu1 }
 0x626   : > { %v1613_v48 = vpop.f32.mrf.mxu1 }
 0x627   : > { %1889 = shalt.err (!%p1886_p1)
}
 0x628   : > { %s1890_s9 = scalar_lea.hbm %s1251_s1, 128  ;;  %s1894_s7 = scalar_lea.hbm %s2421_s8, 256 }
 0x629   : > { %p1891_p4 = scmp.ne.s32.totalorder %s1251_s1, %s1890_s9  ;;  %p1895_p11 = scmp.lt.s32.totalorder %s1251_s1, %s2421_s8 }
 0x62a   : > { %p1896_p2 = scmp.lt.s32.totalorder %s1894_s7, %s1890_s9 }
 0x62b   : > { %p1892_p6 = pnand %p1891_p4, %p2467_p9 }
 0x62c   : > { %p1897_p12 = por %p1896_p2, %p1895_p11 }
 0x62d   : > { %p1893_p8 = pneg %p1892_p6 }
 0x62f   : > { %p1898_p3 = pnand %p1897_p12, %p1893_p8 }
 0x631   : > { %1901 = shalt.err (!%p1898_p3)
}
 0x632   : > { %1629 = dma.vmem_to_hbm [thread:$0]  (%p2467_p9), %s1254_s27, 128, %s1251_s1, %s1225_s15  }
 0x633   : > { %s2468_s18 = sld [smem:[#allocation29_spill]]  ;;  %s443_s17 = scalar_lea.vmem [#allocation13], %s1446_s6 }
 0x634   : > { %s1239_s24 = sshll.u32 %s443_s17, 4  ;;  %s2469_s11 = sld [smem:[#allocation30_spill]]  ;;  %s2366_s24 = int_to_ptr.vmem [resolvable:$true] %s1239_s24 }
 0x635   : > { %s1220_s6 = scalar_lea.sflag [#allocation6], %s2217_s12  ;;  %s1902_s1 = scalar_lea.vmem %s2366_s24, 128 }
 0x636   : > { %p1903_p0 = scmp.ne.s32.totalorder %s2366_s24, %s1902_s1  ;;  %s2006_s30 = smov [#allocation13]  }
 0x637   : > { %s1906_s27 = sshll.u32 %s2006_s30, 4  ;;  %s1907_s27 = int_to_ptr.vmem [resolvable:$false] %s1906_s27 }
 0x638   : > { %p1904_p7 = pnand %p1903_p0, %p2467_p9  ;;  %p1909_p13 = scmp.lt.s32.totalorder %s2366_s24, %s1907_s27 }
 0x639   : > { %v1487_v50 = vld [vmem:[%s2468_s18] ss:$0 sm:$0xff] }
 0x63a   : > { %s2364_s13 = scalar_lea.hbm %s2469_s11, %s1490_s3  ;;  %p1905_p10 = pneg %p1904_p7 }
 0x63b   : > { %s1908_s3 = scalar_lea.vmem %s1907_s27, 256 }
 0x63c   : > { %p1910_p5 = scmp.lt.s32.totalorder %s1908_s3, %s1902_s1 }
 0x63e   : > { %p1911_p1 = por %p1910_p5, %p1909_p13 }
 0x640   : > { %p1912_p4 = pnand %p1911_p1, %p1905_p10 }
 0x6db   : > { %v1148_v49 = vpop.f32.mrf.mxu0 }
 0x6dc   : > { %v1204_v51 = vadd.f32 %v1203_v46, %v1148_v49 }
 0x6dd   : > { %v1604_v52 = vpop.f32.mrf.mxu0 }
 0x6de   : > { %v1216_v53 = vadd.f32 %v1487_v50, %v1204_v51 }
 0x6df   : > { %v1151_v54 = vpop.f32.mrf.mxu0 }
 0x6e0   : > { %1217 = vst.msk [vmem:[%s443_s17] sm:$0xff] %vm483_vm1, %v1216_v53 }
 0x6e1   : > { %v1605_v55 = vpop.f32.mrf.mxu0 }
 0x6e2   : > { %1915 = shalt.err (!%p1912_p4)
}
 0x6e3   : > { %s1916_s15 = scalar_lea.hbm %s2364_s13, 128  ;;  %s1920_s9 = scalar_lea.hbm %s2469_s11, 256 }
 0x6e4   : > { %p1917_p6 = scmp.ne.s32.totalorder %s2364_s13, %s1916_s15  ;;  %p1921_p2 = scmp.lt.s32.totalorder %s2364_s13, %s2469_s11 }
 0x6e5   : > { %p1922_p12 = scmp.lt.s32.totalorder %s1920_s9, %s1916_s15 }
 0x6e6   : > { %p1918_p8 = pnand %p1917_p6, %p2467_p9 }
 0x6e7   : > { %p1923_p3 = por %p1922_p12, %p1921_p2 }
 0x6e8   : > { %p1919_p11 = pneg %p1918_p8 }
 0x6ea   : > { %p1924_p0 = pnand %p1923_p3, %p1919_p11 }
 0x6ec   : > { %1927 = shalt.err (!%p1924_p0)
}
 0x6ed   : > { %1628 = dma.vmem_to_hbm [thread:$0]  (%p2467_p9), %s2366_s24, 128, %s2364_s13, %s1220_s6  }
 0x6ee PF: > { %s2470_s7 = sld [smem:[#allocation21_spill]] }
 0x6ef   : > { %s2471_s22 = sld [smem:[#allocation24_spill]] }
 0x6f0   : > { %s2472_s16 = sld [smem:[#allocation23_spill]] }
 0x6f4   : > { %s1265_s23 = sand.u32 1, %s2470_s7  }
 0x6f5   : > { %p2473_p7 = scmp.ne.s32.totalorder %s2471_s22, 0  ;;  %s1266_s25 = scalar_lea.sflag [#allocation6], %s1265_s23 }
 0x6f6   : > { %p2474_p10 = scmp.ge.s32.totalorder %s2472_s16, 2 }
 0x6f8   : > { %p1650_p13 = pnand %p2474_p10, %p2473_p7 }
 0x6fa   : > { %p1651_p5 = pneg %p1650_p13 }
 0x6fc   : > { %1965 = dma.done.wait (%p1651_p5), %s1266_s25, 128  }
 0x6fd   : > { %1967 = vsyncadd (%p1651_p5), %s1266_s25, 4294967168  ;;  %s1275_s18 = scalar_lea.sflag [#allocation15], %s1265_s23 }
 0x6fe   : > { %1969 = dma.done.wait (%p1651_p5), %s1275_s18, 128  }
 0x6ff   : > { %1971 = vsyncadd (%p1651_p5), %s1275_s18, 4294967168  ;;  %s32_s10 = sadd.s32 1, %s2472_s16   ;;  %s2475_s26 = sld [smem:[#allocation26_spill]] }
 0x700   : > { %p29_p1 = scmp.ge.s32.totalorder %s32_s10, 4   ;;  %s2476_s30 = sld [smem:[#allocation22_spill]] }
 0x701   : > { %s2477_s9 = sld [smem:[#allocation25_spill]]  ;;  %s2478_s27 = smov %s1978_s28 }
 0x702   : > { %s2479_s28 = smov %s1982_s29  ;;  %31 = sbr.rel (!%p29_p1) target bundleno = 16 (0x10), region = 161 }
 0x705   : > { %s2480_s29 = smov %s2475_s26 }
 0x707   :  { %1280 = vsyncpa [#allocation5], 1 }
 0x708   :  { %1282 = vsyncpa [#allocation5 + $0x1], 1 }
 0x709   :  { %1283 = vsyncpa [#allocation8], 1 }
 0x70a   :  { %1285 = vsyncpa [#allocation8 + $0x1], 1 }
 0x70b   :  { %1286 = vsyncpa [#allocation11], 1 }
 0x70c   :  { %1287 = vsyncpa [#allocation6], 1 }
 0x70d   :  { %1289 = vsyncpa [#allocation6 + $0x1], 1 }
 0x70e   :  { %1290 = vsyncpa [#allocation15], 1 }
 0x70f   :  { %1292 = vsyncpa [#allocation15 + $0x1], 1 }

</bundles_post_ra>
